<compile_context>
chip_gen: v5e
topology: v5e:2x2
jax: 0.10.0
libtpu: 0.0.40
codegen_flags: <defaults>
</compile_context>

<pallas_src>
import functools

import jax
import jax.numpy as jnp
from jax import lax
from jax.experimental import pallas as pl
from jax.experimental.pallas import tpu as pltpu


def _round_up(v, m):
    return ((v + m - 1) // m) * m


def _num_tensorcores():
    """Best-effort TensorCore count (2 on v7x, 1 on v5e/v6e). Falls back to 1."""
    try:
        info = pltpu.get_tpu_info()
    except Exception:
        return 1
    for attr in ("num_cores", "core_count", "num_tensorcores",
                 "tensorcores_per_chip", "num_cores_per_chip"):
        v = getattr(info, attr, None)
        if isinstance(v, int) and 1 <= v <= 16:
            return v
    return 1


# ---------------------------------------------------------------------------
# Kernel 1: native (N, C, L) layout — classes on sublanes, spatial on lanes.
# ---------------------------------------------------------------------------
def _focal_kernel_lanes(*refs, gamma, with_alpha, l_total, tn, t_per_split, need_mask):
    """One lane-dense (C, TN) tile.

    refs (with_alpha=True):  x, tgt, alpha | sum_f, sum_a | acc_f, acc_a
    refs (with_alpha=False): x, tgt        | sum_f        | acc_f
      x_ref     (1, C, TN)  logits (native dtype, cast to f32 in-kernel)
      tgt_ref   (1, 1, TN)  int32 class indices
      alpha_ref (C, 1)      f32 per-class weights
      sum*_ref  (1, 1, 1)   per-split f32 partial sums
      acc*_ref  (1, TN)     f32 per-lane VMEM accumulators
    """
    if with_alpha:
        x_ref, tgt_ref, alpha_ref, sumf_ref, suma_ref, accf_ref, acca_ref = refs
    else:
        x_ref, tgt_ref, sumf_ref, accf_ref = refs
        alpha_ref = suma_ref = acca_ref = None

    s = pl.program_id(0)
    bi = pl.program_id(1)
    ti = pl.program_id(2)
    nb = pl.num_programs(1)
    nt = pl.num_programs(2)

    # Per-split init (correct both for serial execution and if the leading
    # "parallel" axis is sharded across TensorCores — each split re-zeroes its
    # own scratch and writes its own output slot).
    @pl.when(jnp.logical_and(bi == 0, ti == 0))
    def _():
        accf_ref[...] = jnp.zeros_like(accf_ref)
        if with_alpha:
            acca_ref[...] = jnp.zeros_like(acca_ref)

    x = x_ref[0].astype(jnp.float32)              # (C, TN)
    tgt = tgt_ref[0]                              # (1, TN) int32
    c, tn_ = x.shape

    # softmax statistics over the class (sublane) axis
    m = jnp.max(x, axis=0, keepdims=True)         # (1, TN)
    e = jnp.exp(x - m)                            # (C, TN)
    sum_e = jnp.sum(e, axis=0, keepdims=True)     # (1, TN)

    # one-hot gather of exp(x_t - m) (reuses e: no second exp) and alpha[target]
    cls = lax.broadcasted_iota(jnp.int32, (c, tn_), 0)
    one_hot = (cls == tgt).astype(jnp.float32)    # (C, TN)
    e_t = jnp.sum(one_hot * e, axis=0, keepdims=True)                 # (1, TN)
    # TODO(synk): smooth-label clamp (self.smooth) not implemented; module default smooth=None.

    epsilon = 1e-10
    pt = e_t / sum_e + epsilon                    # softmax(x)[target] + eps
    logpt = jnp.log(pt)
    if float(gamma) == int(gamma):
        focal_w = lax.integer_pow(1.0 - pt, int(gamma))
    else:
        focal_w = jnp.power(1.0 - pt, gamma)
    f = -focal_w * logpt                          # (1, TN)

    if with_alpha:
        a_t = jnp.sum(one_hot * alpha_ref[...], axis=0, keepdims=True)

    if need_mask:
        # Ragged tail: lanes past the true length carry garbage (no host-side pad).
        start = (s * t_per_split + ti) * tn
        lane = lax.broadcasted_iota(jnp.int32, (1, tn_), 1)
        valid = (start + lane) < l_total
        f = jnp.where(valid, f, 0.0)              # NaN/Inf-safe select
        if with_alpha:
            a_t = jnp.where(valid, a_t, 0.0)

    accf_ref[...] = accf_ref[...] + f
    if with_alpha:
        acca_ref[...] = acca_ref[...] + a_t

    # Per-split finalize: write this split's partial sum exactly once.
    @pl.when(jnp.logical_and(bi == nb - 1, ti == nt - 1))
    def _():
        sumf_ref[...] = jnp.broadcast_to(jnp.sum(accf_ref[...]), sumf_ref.shape)
        if with_alpha:
            suma_ref[...] = jnp.broadcast_to(jnp.sum(acca_ref[...]), suma_ref.shape)


# ---------------------------------------------------------------------------
# Kernel 2: channels-last (M, C) layout — rows on sublanes, classes on lanes.
# (Avoids the HBM transpose the 2-D path previously required.)
# ---------------------------------------------------------------------------
def _focal_kernel_rows(*refs, gamma, with_alpha, m_total, tm, need_mask):
    """One (TM, C) tile of a flat (M, C) classification problem."""
    if with_alpha:
        x_ref, tgt_ref, alpha_ref, sumf_ref, suma_ref, accf_ref, acca_ref = refs
    else:
        x_ref, tgt_ref, sumf_ref, accf_ref = refs
        alpha_ref = suma_ref = acca_ref = None

    ti = pl.program_id(0)

    @pl.when(ti == 0)
    def _():
        accf_ref[...] = jnp.zeros_like(accf_ref)
        if with_alpha:
            acca_ref[...] = jnp.zeros_like(acca_ref)

    x = x_ref[...].astype(jnp.float32)            # (TM, C)
    tgt = tgt_ref[...]                            # (TM, 1) int32
    tm_, c = x.shape

    mx = jnp.max(x, axis=1, keepdims=True)        # (TM, 1)
    e = jnp.exp(x - mx)                           # (TM, C)
    sum_e = jnp.sum(e, axis=1, keepdims=True)     # (TM, 1)

    cls = lax.broadcasted_iota(jnp.int32, (tm_, c), 1)
    one_hot = (cls == tgt).astype(jnp.float32)    # (TM, C)
    e_t = jnp.sum(one_hot * e, axis=1, keepdims=True)

    epsilon = 1e-10
    pt = e_t / sum_e + epsilon
    logpt = jnp.log(pt)
    if float(gamma) == int(gamma):
        focal_w = lax.integer_pow(1.0 - pt, int(gamma))
    else:
        focal_w = jnp.power(1.0 - pt, gamma)
    f = -focal_w * logpt                          # (TM, 1)

    if with_alpha:
        a_t = jnp.sum(one_hot * alpha_ref[...], axis=1, keepdims=True)

    if need_mask:
        row = lax.broadcasted_iota(jnp.int32, (tm_, 1), 0) + ti * tm
        valid = row < m_total
        f = jnp.where(valid, f, 0.0)
        if with_alpha:
            a_t = jnp.where(valid, a_t, 0.0)

    accf_ref[...] = accf_ref[...] + f
    if with_alpha:
        acca_ref[...] = acca_ref[...] + a_t

    @pl.when(ti == pl.num_programs(0) - 1)
    def _():
        sumf_ref[...] = jnp.broadcast_to(jnp.sum(accf_ref[...]), sumf_ref.shape)
        if with_alpha:
            suma_ref[...] = jnp.broadcast_to(jnp.sum(acca_ref[...]), suma_ref.shape)


# ---------------------------------------------------------------------------
# Wrapper
# ---------------------------------------------------------------------------
def focal_loss(logits, target, *, num_class, alpha=None, gamma=2,
               smooth=None, size_average=True):
    """Forward pass of FocalLoss. logits: (N, C, *spatial) or (M, C)."""
    if smooth is not None:
        # TODO(synk): smooth-label clamp not implemented (module default smooth=None).
        raise NotImplementedError("smooth label clamping is not implemented")

    x = jnp.asarray(logits)
    if not jnp.issubdtype(x.dtype, jnp.floating):
        x = x.astype(jnp.float32)
    # bf16 / f16 logits stay narrow end-to-end (halves HBM traffic); cast per-tile in-kernel.

    with_alpha = alpha is not None
    if with_alpha:
        alpha_vec = jnp.asarray(alpha, jnp.float32).reshape(num_class)
        alpha_vec = alpha_vec / jnp.sum(alpha_vec)     # matches the torch list/ndarray branch
    # alpha=None fast path: torch default alpha is ones(C,1), so sum(alpha[t]) == #elements.

    if x.ndim > 2:
        # ------------------- native (N, C, L) path -------------------
        b, c = x.shape[0], x.shape[1]
        assert c == num_class
        l = 1
        for d in x.shape[2:]:
            l *= d
        x3 = x.reshape(b, c, l)                        # pure reshape, no data movement
        tgt3 = jnp.asarray(target, jnp.int32).reshape(b, 1, l)
        m_rows = b * l

        # Tile width: >=512 lanes is already ~85% of the HBM roofline; 8192 is a safe VMEM
        # upper bound on every generation (incl. kernel-body temporaries on 64 MiB v7x).
        tn = min(_round_up(l, 128), 8192)
        n_tiles = pl.cdiv(l, tn)
        n_splits = max(1, min(_num_tensorcores(), 2, n_tiles))   # 1 on v5e/v6e, 2 on v7x
        t_per_split = pl.cdiv(n_tiles, n_splits)
        need_mask = (t_per_split * n_splits * tn) != l

        kernel = functools.partial(
            _focal_kernel_lanes, gamma=gamma, with_alpha=with_alpha,
            l_total=l, tn=tn, t_per_split=t_per_split, need_mask=need_mask)

        def _lane_idx(s, bi, ti):
            # Clamp so duplicated tail tiles (when splits don't divide evenly) stay in
            # bounds; their contribution is masked to zero in-kernel.
            return (bi, 0, jnp.minimum(s * t_per_split + ti, n_tiles - 1))

        in_specs = [pl.BlockSpec((1, num_class, tn), _lane_idx),
                    pl.BlockSpec((1, 1, tn), _lane_idx)]
        inputs = [x3, tgt3]
        out_shapes = [jax.ShapeDtypeStruct((n_splits, 1, 1), jnp.float32)]
        out_specs = [pl.BlockSpec((1, 1, 1), lambda s, bi, ti: (s, 0, 0))]
        scratch = [pltpu.VMEM((1, tn), jnp.float32)]
        if with_alpha:
            in_specs.append(pl.BlockSpec((num_class, 1), lambda s, bi, ti: (0, 0)))
            inputs.append(alpha_vec.reshape(num_class, 1))
            out_shapes.append(jax.ShapeDtypeStruct((n_splits, 1, 1), jnp.float32))
            out_specs.append(pl.BlockSpec((1, 1, 1), lambda s, bi, ti: (s, 0, 0)))
            scratch.append(pltpu.VMEM((1, tn), jnp.float32))

        x_isz = jnp.dtype(x3.dtype).itemsize
        cost = pl.CostEstimate(
            flops=int(10 * b * num_class * l),
            transcendentals=int(b * (num_class + 1) * l),
            bytes_accessed=int(x3.size * x_isz + tgt3.size * 4),
        )

        outs = pl.pallas_call(
            kernel,
            out_shape=tuple(out_shapes),
            grid_spec=pltpu.PrefetchScalarGridSpec(
                num_scalar_prefetch=0,
                grid=(n_splits, b, t_per_split),
                in_specs=in_specs,
                out_specs=out_specs,
                scratch_shapes=scratch),
            compiler_params=pltpu.CompilerParams(
                dimension_semantics=("parallel", "arbitrary", "arbitrary")),
            cost_estimate=cost,
        )(*inputs)

    else:
        # ------------------- channels-last (M, C) path (no transpose copy) -----------
        m_rows, c = x.shape
        assert c == num_class
        x2 = x
        tgt2 = jnp.asarray(target, jnp.int32).reshape(m_rows, 1)

        tm_cap = 4096
        if m_rows <= tm_cap:
            tm, n_tiles, need_mask = m_rows, 1, False
        else:
            tm = tm_cap
            n_tiles = pl.cdiv(m_rows, tm)
            need_mask = (m_rows % tm) != 0

        kernel = functools.partial(
            _focal_kernel_rows, gamma=gamma, with_alpha=with_alpha,
            m_total=m_rows, tm=tm, need_mask=need_mask)

        in_specs = [pl.BlockSpec((tm, num_class), lambda t: (t, 0)),
                    pl.BlockSpec((tm, 1), lambda t: (t, 0))]
        inputs = [x2, tgt2]
        out_shapes = [jax.ShapeDtypeStruct((1, 1), jnp.float32)]
        out_specs = [pl.BlockSpec((1, 1), lambda t: (0, 0))]
        scratch = [pltpu.VMEM((tm, 1), jnp.float32)]
        if with_alpha:
            in_specs.append(pl.BlockSpec((1, num_class), lambda t: (0, 0)))
            inputs.append(alpha_vec.reshape(1, num_class))
            out_shapes.append(jax.ShapeDtypeStruct((1, 1), jnp.float32))
            out_specs.append(pl.BlockSpec((1, 1), lambda t: (0, 0)))
            scratch.append(pltpu.VMEM((tm, 1), jnp.float32))

        outs = pl.pallas_call(
            kernel,
            out_shape=tuple(out_shapes),
            grid_spec=pltpu.PrefetchScalarGridSpec(
                num_scalar_prefetch=0,
                grid=(n_tiles,),
                in_specs=in_specs,
                out_specs=out_specs,
                scratch_shapes=scratch),
            compiler_params=pltpu.CompilerParams(
                dimension_semantics=("arbitrary",)),
        )(*inputs)

    sum_f = jnp.sum(outs[0])
    sum_a = jnp.sum(outs[1]) if with_alpha else jnp.float32(m_rows)

    m_f = jnp.float32(m_rows)
    if size_average:
        # mean over the (M,1,M) broadcast product in the torch code
        return (sum_a / m_f) * (sum_f / m_f)
    return sum_a * sum_f


# ---------------------------------------------------------------------------
# Pure-JAX reference replicating the torch forward (incl. the broadcast quirk)
# ---------------------------------------------------------------------------
def _reference_focal_loss(logits, target, *, num_class, alpha=None, gamma=2,
                          size_average=True):
    x = jnp.asarray(logits, jnp.float32)
    c = x.shape[1]
    if x.ndim > 2:
        perm = (0,) + tuple(range(2, x.ndim)) + (1,)
        flat = jnp.transpose(x, perm).reshape(-1, c)
    else:
        flat = x
    logit = jax.nn.softmax(flat, axis=-1)
    tgt = jnp.asarray(target, jnp.int32).reshape(-1)
    one_hot = jax.nn.one_hot(tgt, num_class, dtype=jnp.float32)
    pt = jnp.sum(one_hot * logit, axis=1) + 1e-10
    logpt = jnp.log(pt)
    if alpha is None:
        alpha_vec = jnp.ones((num_class,), jnp.float32)
    else:
        alpha_vec = jnp.asarray(alpha, jnp.float32)
        alpha_vec = alpha_vec / jnp.sum(alpha_vec)
    a = alpha_vec[tgt]
    f = -((1.0 - pt) ** gamma) * logpt
    if size_average:
        return jnp.mean(a) * jnp.mean(f)       # mean over the (M,1,M) broadcast product
    return jnp.sum(a) * jnp.sum(f)


if __name__ == "__main__":
    key = jax.random.PRNGKey(0)
    k1, k2, k3, k4, k5, k6 = jax.random.split(key, 6)
    C = 4

    # Case 1: 4-D (N, C, H, W), tile-aligned spatial, default alpha, size_average.
    N, H, W = 2, 16, 16
    logits1 = jax.random.normal(k1, (N, C, H, W), dtype=jnp.float32)
    target1 = jax.random.randint(k2, (N, H, W), 0, C, dtype=jnp.int32)
    out1 = jax.block_until_ready(focal_loss(logits1, target1, num_class=C, gamma=2))
    ref1 = _reference_focal_loss(logits1, target1, num_class=C, gamma=2)
    assert jnp.allclose(out1, ref1, rtol=1e-5, atol=1e-6), (out1, ref1)

    # Case 2: 4-D with ragged spatial extent (exercises in-kernel tail masking, no pad),
    #         explicit alpha list, sum reduction.
    H2, W2 = 7, 13
    logits2 = jax.random.normal(k3, (N, C, H2, W2), dtype=jnp.float32)
    target2 = jax.random.randint(k4, (N, H2, W2), 0, C, dtype=jnp.int32)
    alpha = [1.0, 2.0, 3.0, 4.0]
    out2 = jax.block_until_ready(
        focal_loss(logits2, target2, num_class=C, alpha=alpha, gamma=2, size_average=False))
    ref2 = _reference_focal_loss(logits2, target2, num_class=C, alpha=alpha, gamma=2,
                                 size_average=False)
    assert jnp.allclose(out2, ref2, rtol=1e-5, atol=1e-6), (out2, ref2)

    # Case 3: 2-D (M, C) classification layout — channels-last kernel, ragged row tiles.
    M = 5000
    logits3 = jax.random.normal(k5, (M, C), dtype=jnp.float32)
    target3 = jax.random.randint(k6, (M,), 0, C, dtype=jnp.int32)
    out3 = jax.block_until_ready(focal_loss(logits3, target3, num_class=C, gamma=2))
    ref3 = _reference_focal_loss(logits3, target3, num_class=C, gamma=2)
    assert jnp.allclose(out3, ref3, rtol=1e-5, atol=1e-6), (out3, ref3)

    print("KERNEL_OK")
</pallas_src>

<mosaic_0001>
module attributes {stable_mosaic.version = 11 : i64} {
  func.func @_focal_kernel_lanes(%arg0: i32, %arg1: i32, %arg2: i32, %arg3: memref<1x4x256xf32, #tpu.memory_space<vmem>>, %arg4: memref<1x1x256xi32, #tpu.memory_space<vmem>>, %arg5: memref<1x1x1xf32, #tpu.memory_space<vmem>>, %arg6: memref<1x256xf32, #tpu.memory_space<vmem>>) attributes {dimension_semantics = [#tpu.dimension_semantics<parallel>, #tpu.dimension_semantics<arbitrary>, #tpu.dimension_semantics<arbitrary>], iteration_bounds = array<i64: 1, 2, 1>, scalar_prefetch = 0 : i64, scratch_operands = 1 : i64, tpu.core_type = #tpu.core_type<tc>, window_params = [{transform_indices = @transform_0, window_bounds = array<i64: 1, 4, 256>}, {transform_indices = @transform_1, window_bounds = array<i64: 1, 1, 256>}, {transform_indices = @transform_2, window_bounds = array<i64: 1, 1, 1>}]} {
    %c0_i32 = arith.constant 0 : i32
    %0 = arith.cmpi eq, %arg1, %c0_i32 : i32
    %c0_i32_0 = arith.constant 0 : i32
    %1 = arith.cmpi eq, %arg2, %c0_i32_0 : i32
    %2 = arith.andi %0, %1 : i1
    %3 = arith.extui %2 : i1 to i32
    %c0_i32_1 = arith.constant 0 : i32
    %4 = arith.cmpi ne, %3, %c0_i32_1 : i32
    scf.if %4 {
      %cst_18 = arith.constant 0.000000e+00 : f32
      %42 = vector.broadcast %cst_18 : f32 to vector<1x256xf32>
      %c0_19 = arith.constant 0 : index
      %c0_20 = arith.constant 0 : index
      %43 = vector.load %arg6[%c0_19, %c0_20] : memref<1x256xf32, #tpu.memory_space<vmem>>, vector<1x256xf32>
      tpu.vector_store %arg6[%c0_19, %c0_20], %42 {strides = array<i32>} : memref<1x256xf32, #tpu.memory_space<vmem>>, vector<1x256xf32>,
    } else {
    }
    %c0 = arith.constant 0 : index
    %c0_2 = arith.constant 0 : index
    %c0_3 = arith.constant 0 : index
    %5 = vector.load %arg3[%c0, %c0_2, %c0_3] : memref<1x4x256xf32, #tpu.memory_space<vmem>>, vector<1x4x256xf32>
    %6 = vector.shape_cast %5 : vector<1x4x256xf32> to vector<4x256xf32>
    %c0_4 = arith.constant 0 : index
    %c0_5 = arith.constant 0 : index
    %c0_6 = arith.constant 0 : index
    %7 = vector.load %arg4[%c0_4, %c0_5, %c0_6] : memref<1x1x256xi32, #tpu.memory_space<vmem>>, vector<1x1x256xi32>
    %8 = vector.shape_cast %7 : vector<1x1x256xi32> to vector<1x256xi32>
    %cst = arith.constant dense<0xFF800000> : vector<256xf32>
    %9 = vector.multi_reduction <maximumf>, %6, %cst [0] : vector<4x256xf32> to vector<256xf32>
    %10 = vector.shape_cast %9 : vector<256xf32> to vector<1x256xf32>
    %11 = vector.broadcast %10 : vector<1x256xf32> to vector<4x256xf32>
    %12 = arith.subf %6, %11 : vector<4x256xf32>
    %13 = math.exp %12 : vector<4x256xf32>
    %cst_7 = arith.constant dense<0.000000e+00> : vector<256xf32>
    %14 = vector.multi_reduction <add>, %13, %cst_7 [0] : vector<4x256xf32> to vector<256xf32>
    %15 = vector.shape_cast %14 : vector<256xf32> to vector<1x256xf32>
    %16 = tpu.iota {dimensions = array<i32: 0>} : vector<4x256xi32>
    %17 = vector.broadcast %8 : vector<1x256xi32> to vector<4x256xi32>
    %18 = arith.cmpi eq, %16, %17 : vector<4x256xi32>
    %19 = arith.extui %18 : vector<4x256xi1> to vector<4x256xi32>
    %20 = arith.sitofp %19 : vector<4x256xi32> to vector<4x256xf32>
    %21 = arith.mulf %20, %13 : vector<4x256xf32>
    %cst_8 = arith.constant dense<0.000000e+00> : vector<256xf32>
    %22 = vector.multi_reduction <add>, %21, %cst_8 [0] : vector<4x256xf32> to vector<256xf32>
    %23 = vector.shape_cast %22 : vector<256xf32> to vector<1x256xf32>
    %24 = arith.divf %23, %15 : vector<1x256xf32>
    %cst_9 = arith.constant 1.000000e-10 : f32
    %25 = vector.broadcast %cst_9 : f32 to vector<1x256xf32>
    %26 = arith.addf %24, %25 : vector<1x256xf32>
    %27 = math.log %26 : vector<1x256xf32>
    %cst_10 = arith.constant 1.000000e+00 : f32
    %28 = vector.broadcast %cst_10 : f32 to vector<1x256xf32>
    %29 = arith.subf %28, %26 : vector<1x256xf32>
    %30 = arith.mulf %29, %29 : vector<1x256xf32>
    %cst_11 = arith.constant 0.000000e+00 : f32
    %31 = vector.broadcast %cst_11 : f32 to vector<1x256xf32>
    %32 = arith.subf %31, %30 : vector<1x256xf32>
    %33 = arith.mulf %32, %27 : vector<1x256xf32>
    %c0_12 = arith.constant 0 : index
    %c0_13 = arith.constant 0 : index
    %34 = vector.load %arg6[%c0_12, %c0_13] : memref<1x256xf32, #tpu.memory_space<vmem>>, vector<1x256xf32>
    %35 = arith.addf %34, %33 : vector<1x256xf32>
    %c0_14 = arith.constant 0 : index
    %c0_15 = arith.constant 0 : index
    %36 = vector.load %arg6[%c0_14, %c0_15] : memref<1x256xf32, #tpu.memory_space<vmem>>, vector<1x256xf32>
    tpu.vector_store %arg6[%c0_14, %c0_15], %35 {strides = array<i32>} : memref<1x256xf32, #tpu.memory_space<vmem>>, vector<1x256xf32>,
    %c1_i32 = arith.constant 1 : i32
    %37 = arith.cmpi eq, %arg1, %c1_i32 : i32
    %c0_i32_16 = arith.constant 0 : i32
    %38 = arith.cmpi eq, %arg2, %c0_i32_16 : i32
    %39 = arith.andi %37, %38 : i1
    %40 = arith.extui %39 : i1 to i32
    %c0_i32_17 = arith.constant 0 : i32
    %41 = arith.cmpi ne, %40, %c0_i32_17 : i32
    scf.if %41 {
      %c0_18 = arith.constant 0 : index
      %c0_19 = arith.constant 0 : index
      %42 = vector.load %arg6[%c0_18, %c0_19] : memref<1x256xf32, #tpu.memory_space<vmem>>, vector<1x256xf32>
      %43 = vector.shape_cast %42 : vector<1x256xf32> to vector<1x1x256xf32>
      %cst_20 = arith.constant dense<0.000000e+00> : vector<1xf32>
      %44 = vector.multi_reduction <add>, %43, %cst_20 [1, 2] : vector<1x1x256xf32> to vector<1xf32>
      %45 = vector.shape_cast %44 : vector<1xf32> to vector<1x1x1xf32>
      %46 = vector.extract %45[0, 0, 0] : f32 from vector<1x1x1xf32>
      %47 = vector.broadcast %46 : f32 to vector<1x1x1xf32>
      %c0_21 = arith.constant 0 : index
      %c0_22 = arith.constant 0 : index
      %c0_23 = arith.constant 0 : index
      %48 = vector.load %arg5[%c0_21, %c0_22, %c0_23] : memref<1x1x1xf32, #tpu.memory_space<vmem>>, vector<1x1x1xf32>
      tpu.vector_store %arg5[%c0_21, %c0_22, %c0_23], %47 {strides = array<i32>} : memref<1x1x1xf32, #tpu.memory_space<vmem>>, vector<1x1x1xf32>,
    } else {
    }
    return
  }
  func.func @transform_0(%arg0: i32, %arg1: i32, %arg2: i32) -> (i32, i32, i32) {
    %c1_i32 = arith.constant 1 : i32
    %0 = arith.muli %arg0, %c1_i32 : i32
    %1 = arith.addi %0, %arg2 : i32
    %c0_i32 = arith.constant 0 : i32
    %2 = arith.minsi %1, %c0_i32 : i32
    %c0_i32_0 = arith.constant 0 : i32
    %c0_i32_1 = arith.constant 0 : i32
    return %arg1, %c0_i32_0, %2 : i32, i32, i32
  }
  func.func @transform_1(%arg0: i32, %arg1: i32, %arg2: i32) -> (i32, i32, i32) {
    %c1_i32 = arith.constant 1 : i32
    %0 = arith.muli %arg0, %c1_i32 : i32
    %1 = arith.addi %0, %arg2 : i32
    %c0_i32 = arith.constant 0 : i32
    %2 = arith.minsi %1, %c0_i32 : i32
    %c0_i32_0 = arith.constant 0 : i32
    %c0_i32_1 = arith.constant 0 : i32
    return %arg1, %c0_i32_0, %2 : i32, i32, i32
  }
  func.func @transform_2(%arg0: i32, %arg1: i32, %arg2: i32) -> (i32, i32, i32) {
    %c0_i32 = arith.constant 0 : i32
    %c0_i32_0 = arith.constant 0 : i32
    %c0_i32_1 = arith.constant 0 : i32
    return %arg0, %c0_i32, %c0_i32_0 : i32, i32, i32
  }
}

</mosaic_0001>

<bundles_post_ra>
// kernel: tpu_custom_call.1
= control target key start
LH: loop header
LB: loop body
LE: loop exit
PB: predicated region body
PF: predicated region fallthrough
CT: control target
= control target key end

     0   :  { %7 = vsyncpa [#allocation4], 0  ;;  %s915_s0 = inlined_call_operand.hbm [shape: f32[2,4,256], index: 0, kind: input, shape index: {}]   ;;  %s916_s1 = inlined_call_operand.hbm [shape: s32[2,1,256], index: 1, kind: input, shape index: {}]   ;;  %s917_s2 = inlined_call_operand.hbm [shape: f32[1,1,1], index: 2, kind: output, shape index: {}]  }
   0x1   :  { %9 = vsyncpa [#allocation4 + $0x1], 0 }
   0x2   :  { %10 = vsyncpa [#allocation7], 0 }
   0x3   :  { %12 = vsyncpa [#allocation7 + $0x1], 0 }
   0x4   :  { %13 = vsyncpa [#allocation5], 0  ;;  %s793_s9 = smov 0   ;;  %s795_s10 = smov 0  }
   0x5   :  { %s797_s11 = smov 0   ;;  %s799_s12 = smov 0  }
   0x6   :  { %s801_s13 = smov 0   ;;  %s803_s14 = smov 0  }
   0x7 LB: > { %s524_s15 = sadd.s32 4294967295, %s773_s14   ;;  %s34_s16 = sadd.s32 1, %s769_s13  ;;  %s773_s14 = sphi %s803_s14, %s19_s14   ;;  %s769_s13 = sphi %s801_s13, %s925_s13   ;;  %s765_s12 = sphi %s799_s12, %s924_s12   ;;  %s761_s11 = sphi %s797_s11, %s923_s11   ;;  %s757_s10 = sphi %s795_s10, %s922_s10   ;;  %s753_s9 = sphi %s793_s9, %s921_s9  }
   0x8   : > { %p36_p0 = scmp.ge.s32.totalorder %s34_s16, 2  ;;  %s53_s17 = sadd.s32 1, %s761_s11 }
   0x9   : > { %p60_p1 = scmp.ne.s32.totalorder %s761_s11, %s757_s10  ;;  %p61_p2 = scmp.eq.s32.totalorder %s773_s14, 0 }
   0xa   : > { %s927_s16 = smov (%p36_p0, %s34_s16), 0  ;;  %p66_p4 = scmp.ne.s32.totalorder %s757_s10, %s753_s9 }
   0xb   : > { %p829_p3 = por %p61_p2, %p60_p1  ;;  %s48_s19 = ssub.s32 %s769_s13, %s927_s16 }
   0xc   : > { %p67_p5 = scmp.eq.s32.totalorder %s524_s15, 0  ;;  %p51_p6 = scmp.eq.s32.totalorder %s48_s19, 0 }
   0xd   : > { %p563_p8 = scmp.lt.s32.totalorder %s773_s14, 2  ;;  %s150_s22 = sand.u32 1, %s761_s11  }
   0xe   : > { %p838_p7 = por %p67_p5, %p66_p4  ;;  %s543_s23 = sshll.u32 %s769_s13, 3 }
   0xf   : > { %s844_s21 = scalar_select %p51_p6, %s761_s11, %s53_s17  }
  0x10   : > { %s527_s24 = sshll.u32 %s150_s22, 3  ;;  %s164_s27 = scalar_lea.hbm %s915_s0, %s543_s23 }
  0x11   : > { %s166_s28 = sshll.u32 %s164_s27, 4  ;;  %s154_s29 = scalar_lea.vmem [#allocation3], %s527_s24  ;;  %s167_s28 = int_to_ptr.hbm [resolvable:$true] %s166_s28 }
  0x12   : > { %s168_s30 = sshll.u32 %s154_s29, 4  ;;  %p853_p9 = pnand %p563_p8, %p829_p3  ;;  %s169_s30 = int_to_ptr.vmem [resolvable:$true] %s168_s30 }
  0x13   : > { %p532_p10 = scmp.ge.s32.totalorder %s773_s14, 1  ;;  %p197_p11 = scmp.lt.s32.totalorder %s773_s14, 3 }
  0x14   : > { %s530_s4 = sshll.u32 %s150_s22, 1  ;;  %s151_s5 = scalar_lea.sflag [#allocation4], %s150_s22 }
  0x15   : > { %559 = dma.hbm_to_vmem [thread:$0]  (!%p853_p9), %s167_s28, 128, %s169_s30, %s151_s5  }
  0x16   : > { %p198_p12 = pnand %p532_p10, %p197_p11  ;;  %s531_s6 = sshll.u32 %s769_s13, 1 }
  0x17   : > { %s179_s7 = scalar_lea.vmem [#allocation6], %s530_s4  ;;  %s188_s18 = scalar_lea.hbm %s916_s1, %s531_s6 }
  0x18   : > { %s192_s8 = sshll.u32 %s179_s7, 4  ;;  %s190_s19 = sshll.u32 %s188_s18, 4  ;;  %s193_s8 = int_to_ptr.vmem [resolvable:$true] %s192_s8  ;;  %s191_s19 = int_to_ptr.hbm [resolvable:$true] %s190_s19 }
  0x19   : > { %s176_s23 = scalar_lea.sflag [#allocation7], %s150_s22  ;;  %201 = sbr.rel (%p198_p12) target bundleno = 335 (0x14f), region = 28 }
  0x1a   : > { %562 = dma.hbm_to_vmem [thread:$0]  (!%p853_p9), %s191_s19, 32, %s193_s8, %s176_s23  }
  0x1b   : > { %s203_s24 = sand.u32 (!%p198_p12), 1, %s757_s10  }
  0x1c   : > { %s533_s25 = sshll.u32 (!%p198_p12), %s203_s24, 3  ;;  %s204_s26 = scalar_lea.sflag (!%p198_p12), [#allocation4], %s203_s24 }
  0x1d   : > { %s207_s27 = scalar_lea.vmem (!%p198_p12), [#allocation3], %s533_s25 }
  0x1e   : > { %740 = dma.done.wait (%p838_p7), %s204_s26, 128  }
  0x1f   : > { %742 = vsyncadd (%p838_p7), %s204_s26, 4294967168  ;;  %s534_s28 = sshll.u32 %s203_s24, 1  ;;  %s214_s29 = scalar_lea.sflag [#allocation7], %s203_s24 }
  0x20   : > { %s872_s30 = scalar_lea.vmem [#allocation6], %s534_s28 }
  0x21   : > { %744 = dma.done.wait (%p838_p7), %s214_s29, 32  }
  0x22   : > { %746 = vsyncadd (%p838_p7), %s214_s29, 4294967264  ;;  %p247_p13 = scmp.eq.s32.totalorder %s765_s12, 0 }
  0x23   : > { %v253_v0 = vlaneseq (%p247_p13)  ;;  %v775_v1 = vmov (%p247_p13), 0.0  }
  0x24   : > { %252 = sbr.rel (!%p247_p13) target bundleno = 41 (0x29), region = 40 }
  0x25   : > { %vm255_vm0 = vcmp.lt.s32.totalorder (%p247_p13), %v253_v0, 256 }
  0x26   : > { %257 = vst.msk [vmem:[#allocation2] sm:$0x3] (%p247_p13), %vm255_vm0, %v775_v1 }
  0x29 PF: > { %v258_v2 = vld [vmem:[%s207_s27] sm:$0xff]  ;;  %p397_p0 = scmp.eq.s32.totalorder %s765_s12, 1  ;;  %vm266_vm1 = vcmask 1043456   ;;  %v309_v24 = vlaneseq  ;;  %v259_v25 = vld [vmem:[%s872_s30] sm:$0x3]  ;;  %v776_v39 = vmov 0.0  }
  0x2a   : > { %261 = vst [vmem:[#allocation1] ss:$2 sm:$0xff] %v258_v2  ;;  %v311_v27 = vperm.slane %v259_v25, 0  ;;  %v312_v28 = vperm.slane %v259_v25, 1  ;;  %vm388_vm12 = vcmask 1040384   ;;  %vm421_vm14 = vcmask (%p397_p0), 0  }
  0x2b   : > { %v310_v26 = vshrl.u32 %v309_v24, 7  ;;  %vm394_vm13 = vcmp.lt.s32.totalorder %v309_v24, 256 }
  0x2d   : > { %vm313_vm2 = vcmp.eq.s32.totalorder %v310_v26, %v311_v27  ;;  %vm314_vm3 = vcmp.eq.s32.totalorder %v310_v26, %v312_v28 }
  0x2e   : > { %v536_v40 = vsel %vm313_vm2, 1.0, %v776_v39  ;;  %v537_v41 = vsel %vm314_vm3, 1.0, %v776_v39  ;;  %v384_v39 = vld [vmem:[#allocation2] sm:$0x3] }
  0x31   : > { %v262_v3 = vld.sshfl [vmem:[#allocation1] sm:$0xff pattern:$0x75316420]  ;;  %v263_v4 = vld.sshfl [vmem:[#allocation1 + $0x8] sm:$0xff pattern:$0x75316420] }
  0x32   : > { %v267_v5 = vsel %vm266_vm1, %v262_v3, -inf  ;;  %v274_v6 = vsel %vm266_vm1, %v263_v4, -inf }
  0x33   : > { %v268_v7 = vrot.slane %v267_v5, 4  ;;  %v275_v8 = vrot.slane %v274_v6, 4 }
  0x35   : > { %v269_v9 = vmax.f32 %v267_v5, %v268_v7  ;;  %v276_v10 = vmax.f32 %v274_v6, %v275_v8 }
  0x37   : > { %v270_v11 = vrot.slane %v269_v9, 2  ;;  %v277_v12 = vrot.slane %v276_v10, 2 }
  0x39   : > { %v271_v13 = vmax.f32 %v269_v9, %v270_v11  ;;  %v278_v14 = vmax.f32 %v276_v10, %v277_v12 }
  0x3b   : > { %v272_v15 = vrot.slane %v271_v13, 1  ;;  %v279_v16 = vrot.slane %v278_v14, 1 }
  0x3d   : > { %v280_v17 = vmax.f32 %v278_v14, %v279_v16  ;;  %v273_v18 = vmax.f32 %v271_v13, %v272_v15 }
  0x3f   : > { %v283_v19 = vrot.slane %v280_v17, 4 }
  0x41   : > { %v284_v20 = vsel %vm266_vm1, %v273_v18, %v283_v19 }
  0x42   : > { %v286_v21 = vsub.f32 %v258_v2, %v284_v20 }
  0x44   : > { %v287_v22 = vmul.f32 1.442695, %v286_v21 }
  0x46   : > { %617 = vpow2.f32 %v287_v22 }
  0x4c   : > { %v618_v23 = vpop.eup %617 }
  0x4d   : > { %290 = vst [vmem:[#allocation1] ss:$2 sm:$0xff] %v618_v23 }
  0x54   : > { %v291_v29 = vld.sshfl [vmem:[#allocation1] sm:$0xff pattern:$0x75316420]  ;;  %v292_v30 = vld.sshfl [vmem:[#allocation1 + $0x8] sm:$0xff pattern:$0x75316420] }
  0x55   : > { %v295_v31 = vsel %vm266_vm1, %v291_v29, 0.0  ;;  %v302_v32 = vsel %vm266_vm1, %v292_v30, 0.0  ;;  %319 = vst [vmem:[#allocation1] ss:$2 sm:$0xff] %v618_v23 }
  0x56   : > { %v296_v33 = vrot.slane %v295_v31, 4  ;;  %v303_v34 = vrot.slane %v302_v32, 4 }
  0x58   : > { %v297_v35 = vadd.f32 %v296_v33, %v295_v31  ;;  %v304_v36 = vadd.f32 %v303_v34, %v302_v32 }
  0x5a   : > { %v298_v37 = vrot.slane %v297_v35, 2  ;;  %v305_v38 = vrot.slane %v304_v36, 2 }
  0x5c   : > { %v299_v42 = vadd.f32 %v298_v37, %v297_v35  ;;  %v306_v43 = vadd.f32 %v305_v38, %v304_v36  ;;  %v320_v44 = vld.sshfl [vmem:[#allocation1] sm:$0xff pattern:$0x75316420]  ;;  %v321_v45 = vld.sshfl [vmem:[#allocation1 + $0x8] sm:$0xff pattern:$0x75316420] }
  0x5d   : > { %v324_v46 = vmul.f32 %v536_v40, %v320_v44  ;;  %v325_v47 = vmul.f32 %v537_v41, %v321_v45 }
  0x5e   : > { %v300_v48 = vrot.slane %v299_v42, 1  ;;  %v307_v49 = vrot.slane %v306_v43, 1 }
  0x5f   : > { %v326_v50 = vsel %vm266_vm1, %v324_v46, 0.0  ;;  %v333_v51 = vsel %vm266_vm1, %v325_v47, 0.0 }
  0x60   : > { %v301_v52 = vadd.f32 %v300_v48, %v299_v42  ;;  %v308_v53 = vadd.f32 %v307_v49, %v306_v43  ;;  %v327_v54 = vrot.slane %v326_v50, 4  ;;  %v334_v55 = vrot.slane %v333_v51, 4 }
  0x62   : > { %619 = vrcp.f32 %v301_v52  ;;  %v328_v56 = vadd.f32 %v327_v54, %v326_v50  ;;  %v335_v57 = vadd.f32 %v334_v55, %v333_v51  ;;  %v349_v3 = vand.u32 2147483647, %v301_v52 }
  0x63   : > { %621 = vrcp.f32 %v308_v53  ;;  %v351_v4 = vand.u32 2147483648, %v301_v52  ;;  %v366_v8 = vand.u32 2147483648, %v308_v53  ;;  %v364_v11 = vand.u32 2147483647, %v308_v53 }
  0x64   : > { %v329_v58 = vrot.slane %v328_v56, 2  ;;  %v336_v59 = vrot.slane %v335_v57, 2  ;;  %vm345_vm6 = vweird.f32 %v301_v52  ;;  %vm360_vm8 = vweird.f32 %v308_v53 }
  0x65   : > { %v352_v13 = vor.u32 1.1754944e-38, %v351_v4  ;;  %vm350_vm9 = vcmp.eq.f32.partialorder %v349_v3, 8.507059e+37  ;;  %v367_v17 = vor.u32 1.1754944e-38, %v366_v8  ;;  %vm365_vm11 = vcmp.eq.f32.partialorder %v364_v11, 8.507059e+37 }
  0x66   : > { %v330_v62 = vadd.f32 %v329_v58, %v328_v56  ;;  %v337_v0 = vadd.f32 %v336_v59, %v335_v57 }
  0x68   : > { %v620_v60 = vpop.eup %619  ;;  %v331_v6 = vrot.slane %v330_v62, 1  ;;  %v338_v9 = vrot.slane %v337_v0, 1 }
  0x69   : > { %v622_v61 = vpop.eup %621  ;;  %v341_v63 = vmul.f32 %v620_v60, %v301_v52  ;;  %vm346_vm4 = vweird.f32 %v620_v60 }
  0x6a   : > { %v356_v1 = vmul.f32 %v622_v61, %v308_v53  ;;  %vm361_vm5 = vweird.f32 %v622_v61  ;;  %vm347_vm7 = vmor %vm345_vm6, %vm346_vm4  ;;  %v332_v15 = vadd.f32 %v331_v6, %v330_v62  ;;  %v339_v18 = vadd.f32 %v338_v9, %v337_v0 }
  0x6b   : > { %v342_v2 = vsub.f32 1.0, %v341_v63  ;;  %vm362_vm10 = vmor %vm360_vm8, %vm361_vm5 }
  0x6c   : > { %v357_v5 = vsub.f32 1.0, %v356_v1 }
  0x6d   : > { %v343_v7 = vmul.f32 %v620_v60, %v342_v2 }
  0x6e   : > { %v358_v10 = vmul.f32 %v622_v61, %v357_v5 }
  0x6f   : > { %v344_v12 = vadd.f32 %v620_v60, %v343_v7 }
  0x70   : > { %v359_v14 = vadd.f32 %v622_v61, %v358_v10 }
  0x71   : > { %v348_v16 = vsel %vm347_vm7, %v620_v60, %v344_v12 }
  0x72   : > { %v353_v19 = vsel %vm350_vm9, %v352_v13, %v348_v16  ;;  %v363_v20 = vsel %vm362_vm10, %v622_v61, %v359_v14 }
  0x73   : > { %v354_v21 = vmul.f32 %v353_v19, %v332_v15  ;;  %v368_v22 = vsel %vm365_vm11, %v367_v17, %v363_v20 }
  0x74   : > { %v369_v23 = vmul.f32 %v368_v22, %v339_v18 }
  0x75   : > { %v370_v25 = vadd.f32 1e-10, %v354_v21 }
  0x76   : > { %v371_v26 = vadd.f32 1e-10, %v369_v23 }
  0x77   : > { %623 = vlog2.f32 %v370_v25  ;;  %v376_v28 = vsub.f32 1.0, %v370_v25 }
  0x78   : > { %625 = vlog2.f32 %v371_v26  ;;  %v377_v27 = vsub.f32 1.0, %v371_v26 }
  0x79   : > { %v378_v31 = vmul.f32 %v376_v28, %v376_v28 }
  0x7a   : > { %v379_v29 = vmul.f32 %v377_v27, %v377_v27 }
  0x7b   : > { %v380_v36 = vsub.f32 0.0, %v378_v31 }
  0x7c   : > { %v381_v35 = vsub.f32 0.0, %v379_v29 }
  0x7d   : > { %v624_v30 = vpop.eup %623 }
  0x7e   : > { %v626_v32 = vpop.eup %625  ;;  %v373_v33 = vmul.f32 0.6931472, %v624_v30 }
  0x7f   : > { %v375_v34 = vmul.f32 0.6931472, %v626_v32 }
  0x80   : > { %v382_v38 = vmul.f32 %v380_v36, %v373_v33 }
  0x81   : > { %v383_v37 = vmul.f32 %v381_v35, %v375_v34 }
  0x83   : > { %v387_v40 = vrot.slane %v383_v37, 7 }
  0x84   : > { %401 = sbr.rel (!%p397_p0) target bundleno = 329 (0x149), region = 44 }
  0x85   : > { %v389_v41 = vsel %vm388_vm12, %v382_v38, %v387_v40 }
  0x86   : > { %v391_v42 = vadd.f32 %v389_v41, %v384_v39 }
  0x88   : > { %396 = vst.msk [vmem:[#allocation2] sm:$0x3] %vm394_vm13, %v391_v42 }
  0x8f   : > { %v402_v43 = vld [vmem:[#allocation2] sm:$0x3] }
  0x90   : > { %v404_v44 = vperm.slane %v402_v43, 0  ;;  %v405_v45 = vperm.slane %v402_v43, 1 }
  0x92   : > { %v408_v46 = vsel %vm388_vm12, %v404_v44, 0.0  ;;  %v409_v47 = vsel %vm388_vm12, %v405_v45, 0.0 }
  0x93   : > { %v410_v48 = vadd.f32 %v409_v47, %v408_v46 }
  0x95   : > { %411 = vadd.xlane.f32.xlu0 %v410_v48 }
 0x108   : > { %v412_v49 = vpop.xlane.xlu0 %411 }
 0x109   : > { %v413_v50 = vrot.slane %v412_v49, 4 }
 0x10b   : > { %v414_v51 = vadd.f32 %v413_v50, %v412_v49 }
 0x10d   : > { %v415_v52 = vrot.slane %v414_v51, 2 }
 0x10f   : > { %v416_v53 = vadd.f32 %v415_v52, %v414_v51 }
 0x111   : > { %v417_v54 = vrot.slane %v416_v53, 1 }
 0x113   : > { %v418_v55 = vadd.f32 %v417_v54, %v416_v53 }
 0x115   : > { %546 = vpush %v418_v55 }
 0x146   : > { %s547_s20 = spop %546 }
 0x147   : > { %v420_v24 = vstv %s547_s20 }
 0x148   : > { %422 = vst.msk [vmem:[#allocation8] sm:$0x1] %vm421_vm14, %v420_v24 }
 0x149 PF: > { %p564_p1 = scmp.eq.s32.totalorder %s524_s15, 1  ;;  %s432_s3 = sshll.u32 %s917_s2, 4  ;;  %s433_s3 = int_to_ptr.hbm [resolvable:$true] %s432_s3 }
 0x14a   : > { %s777_s4 = smov [#allocation8]  }
 0x14b   : > { %s430_s5 = sshll.u32 %s777_s4, 4  ;;  %s431_s5 = int_to_ptr.vmem [resolvable:$true] %s430_s5 }
 0x14c   : > { %553 = dma.vmem_to_hbm [thread:$0]  (%p564_p1), %s431_s5, 16, %s433_s3, [#allocation5]  }
 0x14d   : > { %748 = dma.done.wait (%p564_p1), [#allocation5], 16  }
 0x14e   : > { %750 = vsyncadd (%p564_p1), [#allocation5], 4294967280 }
 0x14f PF: > { %s19_s14 = sadd.s32 1, %s773_s14   ;;  %s921_s9 = smov %s757_s10 }
 0x150   : > { %p16_p2 = scmp.ge.s32.totalorder %s19_s14, 4   ;;  %s922_s10 = smov %s761_s11 }
 0x151   : > { %s923_s11 = smov %s844_s21  ;;  %s924_s12 = smov %s769_s13 }
 0x152   : > { %s925_s13 = smov %s927_s16  ;;  %18 = sbr.rel (!%p16_p2) target bundleno = 7 (0x7), region = 87 }
 0x157   :  { %446 = vsyncpa [#allocation4], 1 }
 0x158   :  { %448 = vsyncpa [#allocation4 + $0x1], 1 }
 0x159   :  { %449 = vsyncpa [#allocation7], 1 }
 0x15a   :  { %451 = vsyncpa [#allocation7 + $0x1], 1 }
 0x15b   :  { %452 = vsyncpa [#allocation5], 1 }
 0x15c   :  { %454 = vsyncpa [#allocation5 + $0x1], 1 }

</bundles_post_ra>
